<compile_context>
chip_gen: v7x
topology: tpu7x:2x2x1
jax: 0.10.0
libtpu: 0.0.40
codegen_flags: <defaults>
</compile_context>

<pallas_src>
import jax
import jax.numpy as jnp
from jax.experimental import pallas as pl
from jax.experimental.pallas import tpu as pltpu


def _round_up(x, m):
    return ((x + m - 1) // m) * m


def mlp_kernel(t_ref,                 # scalar prefetch (tail already selected by index_map)
               x_ref,                 # (d, TB)        feature-major batch tile
               head_ref,              # (H, H+d+2)     [ w2^T | w1^T | b1 | b2 ]
               tail_ref,              # (H+8, H+1)     [[ wt1^T | bt1 ], [ wt2^T | bt2 ] (zero-padded rows)]
               out_ref):              # (out_dim, TB)  [ mu ; std ]
    del t_ref
    d = x_ref.shape[0]
    H = head_ref.shape[0]
    out_dim = out_ref.shape[0]
    bot = tail_ref.shape[0] - H       # padded bottom band (multiple of 8, >= out_dim)

    x = x_ref[...]                    # (d, TB)
    head = head_ref[...]              # (H, H+d+2)

    # ---- layer 1: K = d (tiny) -> VPU outer-product accumulate, skip the MXU ----
    h = head[:, H + d:H + d + 1]                      # b1 (H, 1)
    for k in range(d):
        h = h + head[:, H + k:H + k + 1] * x[k:k + 1, :]
    h = jnp.maximum(h, 0.0)                           # (H, TB)

    # ---- layer 2 (head): MXU ----
    h = jnp.dot(head[:, 0:H], h, preferred_element_type=jnp.float32) \
        + head[:, H + d + 1:H + d + 2]
    h = jnp.maximum(h, 0.0)

    # ---- tail[t]: Linear -> ReLU -> Linear ----
    tail = tail_ref[...]                              # (H+8, H+1)
    h = jnp.dot(tail[0:H, 0:H], h, preferred_element_type=jnp.float32) \
        + tail[0:H, H:H + 1]
    h = jnp.maximum(h, 0.0)
    o = jnp.dot(tail[H:H + bot, 0:H], h, preferred_element_type=jnp.float32) \
        + tail[H:H + bot, H:H + 1]                    # (bot, TB); rows >= out_dim are padding

    # torch.chunk(., 2, dim=1) == split along the feature (sublane) axis here.
    half = out_dim // 2
    out_ref[0:half, :] = o[0:half, :]                           # mu
    out_ref[half:out_dim, :] = jnp.exp(0.5 * o[half:out_dim, :])  # std = sqrt(exp(h))


def _pick_tb(B):
    """Batch tile on the 128-lane axis."""
    if B <= 128:
        return B                      # single block == full array dim (always legal)
    tb = 512                          # big tiles: fewer ~0.35us grid steps on v5e/v6e
    while tb > 128 and -(-B // tb) < 2:   # keep >= 2 steps so v7x can use both cores
        tb //= 2
    return tb


@jax.jit
def mlp_forward(x, packed, t):
    """MLP.forward(x, t) -> (mu, std).  `t` is a runtime (traced) integer."""
    head, tail = packed
    B, d = x.shape
    H = head.shape[0]
    N = tail.shape[0]
    out_dim = 2 * d

    TB = _pick_tb(B)
    grid = (pl.cdiv(B, TB),)

    x_fm = x.T                        # feature-major: batch on lanes
    # Clamp t (SMEM-driven index_maps have no runtime bounds check).
    t_idx = jnp.clip(jnp.asarray(t, jnp.int32), 0, N - 1).reshape((1,))

    grid_spec = pltpu.PrefetchScalarGridSpec(
        num_scalar_prefetch=1,
        grid=grid,
        in_specs=[
            pl.BlockSpec((d, TB), lambda i, t: (0, i)),                    # x (feature-major)
            pl.BlockSpec(head.shape, lambda i, t: (0, 0)),                 # packed head (VMEM-resident)
            pl.BlockSpec((pl.Squeezed(),) + tuple(tail.shape[1:]),
                         lambda i, t: (t[0], 0, 0)),                       # packed tail[t]
        ],
        out_specs=pl.BlockSpec((out_dim, TB), lambda i, t: (0, i)),
    )

    flops = 2 * B * (d * H + 2 * H * H + H * out_dim)
    cost = pl.CostEstimate(
        flops=flops,
        transcendentals=B * d,
        bytes_accessed=4 * (B * (d + out_dim) + head.size + tail.size // N))

    o = pl.pallas_call(
        mlp_kernel,
        out_shape=jax.ShapeDtypeStruct((out_dim, B), jnp.float32),
        grid_spec=grid_spec,
        compiler_params=pltpu.CompilerParams(
            dimension_semantics=("parallel",)),
        cost_estimate=cost,
    )(t_idx, x_fm, head, tail)

    return o[:d, :].T, o[d:, :].T     # (mu, std) back to batch-major


def pack_params(params):
    """Pack the 8 raw parameter arrays into 2 tile-aligned buffers:
       head: (H, H+d+2)               = [ w2^T | w1^T | b1^T | b2^T ]
       tail: (N, H+rup(2d,8), H+1)    = [[ wt1^T | bt1^T ],
                                          [ wt2^T | bt2^T ] (zero-padded rows)]
    so the kernel needs only 3 pipelined input streams (x, head, tail[t])."""
    (w1, b1, w2, b2, wt1, bt1, wt2, bt2) = params
    d, H = w1.shape
    N, _, out_dim = wt2.shape
    head = jnp.concatenate([w2.T, w1.T, b1.T, b2.T], axis=1)             # (H, H+d+2)
    top = jnp.concatenate([jnp.swapaxes(wt1, 1, 2),
                           jnp.swapaxes(bt1, 1, 2)], axis=2)             # (N, H, H+1)
    bot = jnp.concatenate([jnp.swapaxes(wt2, 1, 2),
                           jnp.swapaxes(bt2, 1, 2)], axis=2)             # (N, out_dim, H+1)
    bot = jnp.pad(bot, ((0, 0), (0, _round_up(out_dim, 8) - out_dim), (0, 0)))
    tail = jnp.concatenate([top, bot], axis=1)                           # (N, H+8, H+1)
    return head.astype(jnp.float32), tail.astype(jnp.float32)


def init_params(key, N=40, data_dim=2, hidden_dim=64):
    """Deterministic synthetic init matching the PyTorch module's shapes.
    Weights stored as (in_features, out_features); biases as (1, out_features)."""
    ks = jax.random.split(key, 8)
    scale = 0.1
    w1 = scale * jax.random.normal(ks[0], (data_dim, hidden_dim), jnp.float32)
    b1 = scale * jax.random.normal(ks[1], (1, hidden_dim), jnp.float32)
    w2 = scale * jax.random.normal(ks[2], (hidden_dim, hidden_dim), jnp.float32)
    b2 = scale * jax.random.normal(ks[3], (1, hidden_dim), jnp.float32)
    wt1 = scale * jax.random.normal(ks[4], (N, hidden_dim, hidden_dim), jnp.float32)
    bt1 = scale * jax.random.normal(ks[5], (N, 1, hidden_dim), jnp.float32)
    wt2 = scale * jax.random.normal(ks[6], (N, hidden_dim, data_dim * 2), jnp.float32)
    bt2 = scale * jax.random.normal(ks[7], (N, 1, data_dim * 2), jnp.float32)
    return (w1, b1, w2, b2, wt1, bt1, wt2, bt2)


def reference_forward(x, params, t):
    """Pure-JAX reference mirroring the PyTorch forward, for validation."""
    (w1, b1, w2, b2, wt1_all, bt1_all, wt2_all, bt2_all) = params
    h = jnp.maximum(x @ w1 + b1, 0.0)
    h = jnp.maximum(h @ w2 + b2, 0.0)
    h = jnp.maximum(h @ wt1_all[t] + bt1_all[t], 0.0)
    tmp = h @ wt2_all[t] + bt2_all[t]
    d = x.shape[1]
    mu, hh = tmp[:, :d], tmp[:, d:]
    return mu, jnp.sqrt(jnp.exp(hh))


if __name__ == "__main__":
    N, data_dim, hidden_dim = 40, 2, 64
    batch = 200          # not a multiple of 128 -> exercises the ragged last block + 2-step grid

    key = jax.random.PRNGKey(0)
    kx, kp = jax.random.split(key)
    x = jax.random.normal(kx, (batch, data_dim), jnp.float32)
    params = init_params(kp, N=N, data_dim=data_dim, hidden_dim=hidden_dim)
    packed = pack_params(params)      # packed once, reused across calls / t

    ok = True
    for t in (3, 17):    # same compiled executable for both t (no static-t recompile)
        mu, std = mlp_forward(x, packed, t)
        jax.block_until_ready((mu, std))
        mu_ref, std_ref = reference_forward(x, params, t)
        ok &= mu.shape == (batch, data_dim) and std.shape == (batch, data_dim)
        ok &= bool(jnp.allclose(mu, mu_ref, atol=1e-5, rtol=1e-5))
        ok &= bool(jnp.allclose(std, std_ref, atol=1e-5, rtol=1e-5))

    assert ok
    print("KERNEL_OK")
</pallas_src>

<mosaic_0001>
module attributes {stable_mosaic.version = 11 : i64} {
  func.func @mlp_kernel(%arg0: i32, %arg1: memref<1xi32, #tpu.memory_space<smem>>, %arg2: memref<2x128xf32, #tpu.memory_space<vmem>>, %arg3: memref<64x68xf32, #tpu.memory_space<vmem>>, %arg4: memref<1x72x65xf32, #tpu.memory_space<vmem>>, %arg5: memref<4x128xf32, #tpu.memory_space<vmem>>) attributes {dimension_semantics = [#tpu.dimension_semantics<parallel>], iteration_bounds = array<i64: 2>, scalar_prefetch = 1 : i64, scratch_operands = 0 : i64, tpu.core_type = #tpu.core_type<tc>, window_params = [{transform_indices = @transform_0, window_bounds = array<i64: 2, 128>}, {pipeline_mode = #tpu.pipeline_mode<synchronous>, transform_indices = @transform_1, window_bounds = array<i64: 64, 68>}, {transform_indices = @transform_2, window_bounds = array<i64: 1, 72, 65>}, {transform_indices = @transform_3, window_bounds = array<i64: 4, 128>}]} {
    %c0 = arith.constant 0 : index
    %c0_0 = arith.constant 0 : index
    %0 = vector.load %arg2[%c0, %c0_0] : memref<2x128xf32, #tpu.memory_space<vmem>>, vector<2x128xf32>
    %c0_1 = arith.constant 0 : index
    %c0_2 = arith.constant 0 : index
    %1 = vector.load %arg3[%c0_1, %c0_2] : memref<64x68xf32, #tpu.memory_space<vmem>>, vector<64x68xf32>
    %2 = vector.extract_strided_slice %1 {offsets = [0, 66], sizes = [64, 1], strides = [1, 1]} : vector<64x68xf32> to vector<64x1xf32>
    %3 = vector.extract_strided_slice %1 {offsets = [0, 64], sizes = [64, 1], strides = [1, 1]} : vector<64x68xf32> to vector<64x1xf32>
    %4 = vector.extract_strided_slice %0 {offsets = [0, 0], sizes = [1, 128], strides = [1, 1]} : vector<2x128xf32> to vector<1x128xf32>
    %5 = vector.broadcast %3 : vector<64x1xf32> to vector<64x128xf32>
    %6 = vector.broadcast %4 : vector<1x128xf32> to vector<64x128xf32>
    %7 = arith.mulf %5, %6 : vector<64x128xf32>
    %8 = vector.broadcast %2 : vector<64x1xf32> to vector<64x128xf32>
    %9 = arith.addf %8, %7 : vector<64x128xf32>
    %10 = vector.extract_strided_slice %1 {offsets = [0, 65], sizes = [64, 1], strides = [1, 1]} : vector<64x68xf32> to vector<64x1xf32>
    %11 = vector.extract_strided_slice %0 {offsets = [1, 0], sizes = [1, 128], strides = [1, 1]} : vector<2x128xf32> to vector<1x128xf32>
    %12 = vector.broadcast %10 : vector<64x1xf32> to vector<64x128xf32>
    %13 = vector.broadcast %11 : vector<1x128xf32> to vector<64x128xf32>
    %14 = arith.mulf %12, %13 : vector<64x128xf32>
    %15 = arith.addf %9, %14 : vector<64x128xf32>
    %cst = arith.constant 0.000000e+00 : f32
    %16 = vector.broadcast %cst : f32 to vector<64x128xf32>
    %17 = arith.maximumf %15, %16 : vector<64x128xf32>
    %18 = vector.extract_strided_slice %1 {offsets = [0, 0], sizes = [64, 64], strides = [1, 1]} : vector<64x68xf32> to vector<64x64xf32>
    %cst_3 = arith.constant dense<0.000000e+00> : vector<64x128xf32>
    %19 = tpu.matmul %18, %17, %cst_3 {dimension_numbers = #tpu.dot_dimension_numbers<[1], [0], [0], [1], [0, 0, 1, 1], [], []>} : vector<64x64xf32>, vector<64x128xf32>, vector<64x128xf32> -> vector<64x128xf32>
    %20 = vector.extract_strided_slice %1 {offsets = [0, 67], sizes = [64, 1], strides = [1, 1]} : vector<64x68xf32> to vector<64x1xf32>
    %21 = vector.broadcast %20 : vector<64x1xf32> to vector<64x128xf32>
    %22 = arith.addf %19, %21 : vector<64x128xf32>
    %cst_4 = arith.constant 0.000000e+00 : f32
    %23 = vector.broadcast %cst_4 : f32 to vector<64x128xf32>
    %24 = arith.maximumf %22, %23 : vector<64x128xf32>
    %c0_5 = arith.constant 0 : index
    %c0_6 = arith.constant 0 : index
    %c0_7 = arith.constant 0 : index
    %25 = vector.load %arg4[%c0_5, %c0_6, %c0_7] : memref<1x72x65xf32, #tpu.memory_space<vmem>>, vector<1x72x65xf32>
    %26 = vector.shape_cast %25 : vector<1x72x65xf32> to vector<72x65xf32>
    %27 = vector.extract_strided_slice %26 {offsets = [0, 0], sizes = [64, 64], strides = [1, 1]} : vector<72x65xf32> to vector<64x64xf32>
    %cst_8 = arith.constant dense<0.000000e+00> : vector<64x128xf32>
    %28 = tpu.matmul %27, %24, %cst_8 {dimension_numbers = #tpu.dot_dimension_numbers<[1], [0], [0], [1], [0, 0, 1, 1], [], []>} : vector<64x64xf32>, vector<64x128xf32>, vector<64x128xf32> -> vector<64x128xf32>
    %29 = vector.extract_strided_slice %26 {offsets = [0, 64], sizes = [64, 1], strides = [1, 1]} : vector<72x65xf32> to vector<64x1xf32>
    %30 = vector.broadcast %29 : vector<64x1xf32> to vector<64x128xf32>
    %31 = arith.addf %28, %30 : vector<64x128xf32>
    %cst_9 = arith.constant 0.000000e+00 : f32
    %32 = vector.broadcast %cst_9 : f32 to vector<64x128xf32>
    %33 = arith.maximumf %31, %32 : vector<64x128xf32>
    %34 = vector.extract_strided_slice %26 {offsets = [64, 0], sizes = [8, 64], strides = [1, 1]} : vector<72x65xf32> to vector<8x64xf32>
    %cst_10 = arith.constant dense<0.000000e+00> : vector<8x128xf32>
    %35 = tpu.matmul %34, %33, %cst_10 {dimension_numbers = #tpu.dot_dimension_numbers<[1], [0], [0], [1], [0, 0, 1, 1], [], []>} : vector<8x64xf32>, vector<64x128xf32>, vector<8x128xf32> -> vector<8x128xf32>
    %36 = vector.extract_strided_slice %26 {offsets = [64, 64], sizes = [8, 1], strides = [1, 1]} : vector<72x65xf32> to vector<8x1xf32>
    %37 = vector.broadcast %36 : vector<8x1xf32> to vector<8x128xf32>
    %38 = arith.addf %35, %37 : vector<8x128xf32>
    %39 = vector.extract_strided_slice %38 {offsets = [0, 0], sizes = [2, 128], strides = [1, 1]} : vector<8x128xf32> to vector<2x128xf32>
    %c0_11 = arith.constant 0 : index
    %c0_12 = arith.constant 0 : index
    %40 = vector.load %arg5[%c0_11, %c0_12] : memref<4x128xf32, #tpu.memory_space<vmem>>, vector<2x128xf32>
    tpu.vector_store %arg5[%c0_11, %c0_12], %39 {strides = array<i32>} : memref<4x128xf32, #tpu.memory_space<vmem>>, vector<2x128xf32>,
    %41 = vector.extract_strided_slice %38 {offsets = [2, 0], sizes = [2, 128], strides = [1, 1]} : vector<8x128xf32> to vector<2x128xf32>
    %cst_13 = arith.constant 5.000000e-01 : f32
    %42 = vector.broadcast %cst_13 : f32 to vector<2x128xf32>
    %43 = arith.mulf %42, %41 : vector<2x128xf32>
    %44 = math.exp %43 : vector<2x128xf32>
    %c2 = arith.constant 2 : index
    %c0_14 = arith.constant 0 : index
    %45 = vector.load %arg5[%c2, %c0_14] : memref<4x128xf32, #tpu.memory_space<vmem>>, vector<2x128xf32>
    tpu.vector_store %arg5[%c2, %c0_14], %44 {strides = array<i32>} : memref<4x128xf32, #tpu.memory_space<vmem>>, vector<2x128xf32>,
    return
  }
  func.func @transform_0(%arg0: i32, %arg1: memref<1xi32, #tpu.memory_space<smem>>) -> (i32, i32) {
    %c0_i32 = arith.constant 0 : i32
    %c0_i32_0 = arith.constant 0 : i32
    return %c0_i32, %arg0 : i32, i32
  }
  func.func @transform_1(%arg0: i32, %arg1: memref<1xi32, #tpu.memory_space<smem>>) -> (i32, i32) {
    %c0_i32 = arith.constant 0 : i32
    %c0_i32_0 = arith.constant 0 : i32
    %c0_i32_1 = arith.constant 0 : i32
    return %c0_i32, %c0_i32_0 : i32, i32
  }
  func.func @transform_2(%arg0: i32, %arg1: memref<1xi32, #tpu.memory_space<smem>>) -> (i32, i32, i32) {
    %c0 = arith.constant 0 : index
    %0 = memref.load %arg1[%c0] : memref<1xi32, #tpu.memory_space<smem>>
    %c0_i32 = arith.constant 0 : i32
    %c0_i32_0 = arith.constant 0 : i32
    %c0_i32_1 = arith.constant 0 : i32
    return %0, %c0_i32, %c0_i32_0 : i32, i32, i32
  }
  func.func @transform_3(%arg0: i32, %arg1: memref<1xi32, #tpu.memory_space<smem>>) -> (i32, i32) {
    %c0_i32 = arith.constant 0 : i32
    %c0_i32_0 = arith.constant 0 : i32
    return %c0_i32, %arg0 : i32, i32
  }
}

</mosaic_0001>

<bundles_post_ra>
// kernel: mlp_forward.1
= control target key start
LH: loop header
LB: loop body
LE: loop exit
PB: predicated region body
PF: predicated region fallthrough
CT: control target
= control target key end

     0   :  { %s1111_s17 = smov 0   ;;  %s1243_s0 = inlined_call_operand.<no memory space> [shape: s32[1], index: 0, kind: input, shape index: {}]   ;;  %s1244_s1 = inlined_call_operand.vmem [shape: f32[2,200], index: 1, kind: input, shape index: {}]   ;;  %s1245_s2 = inlined_call_operand.vmem [shape: f32[64,68], index: 2, kind: input, shape index: {}]   ;;  %s1246_s3 = inlined_call_operand.vmem [shape: f32[40,72,65], index: 3, kind: input, shape index: {}]   ;;  %s1247_s4 = inlined_call_operand.vmem [shape: f32[4,200], index: 4, kind: output, shape index: {}]  }
   0x1   :  { %9 = sst [smem:[#allocation3]] %s1243_s0 }
   0x2 LB: > { %s846_s18 = sadd.s32 4294967295, %s1074_s17   ;;  %p850_p0 = scmp.ge.s32.totalorder %s1074_s17, 1  ;;  %s1074_s17 = sphi %s1111_s17, %s15_s17  }
   0x3   : > { %p152_p1 = scmp.lt.s32.totalorder %s1074_s17, 3 }
   0x5   : > { %p153_p2 = pnand %p850_p0, %p152_p1 }
   0x6   : > { %v196_v0 = vld [vmem:[%s1245_s2] sm:$0xff] (!%p153_p2)  ;;  %v1076_v1 = vmov (!%p153_p2), 66   ;;  %v1077_v2 = vmov (!%p153_p2), 64   ;;  %v1125_v3 = vld [vmem:[%s1245_s2 + $0x8] sm:$0xff] (!%p153_p2)  ;;  %v1132_v4 = vld [vmem:[%s1245_s2 + $0x18] sm:$0xff] (!%p153_p2)  ;;  %v1078_v5 = vmov (!%p153_p2), 65   ;;  %v244_v14 = vlaneseq (!%p153_p2) }
   0x7   : > { %156 = sbr.rel (%p153_p2) target bundleno = 913 (0x391), region = 32  ;;  %1050 = vset.pattern.permute.xlu1 (!%p153_p2), %v1076_v1  ;;  %1049 = vset.pattern.permute.xlu0 (!%p153_p2), %v1077_v2  ;;  %v1139_v6 = vld [vmem:[%s1245_s2 + $0x28] sm:$0xff] (!%p153_p2)  ;;  %v1144_v7 = vld [vmem:[%s1245_s2 + $0x10] sm:$0xff] (!%p153_p2)  ;;  %v1150_v8 = vld [vmem:[%s1245_s2 + $0x38] sm:$0xff] (!%p153_p2)  ;;  %vm388_vm0 = vcmask (!%p153_p2), 523264   ;;  %v1079_v11 = vmov (!%p153_p2), 67  }
   0x8   : > { %257 = vperm.xlu1 (!%p153_p2), %1050, %v196_v0   ;;  %206 = vperm.xlu0 (!%p153_p2), %1049, %v196_v0   ;;  %v1161_v9 = vld [vmem:[%s1245_s2 + $0x20] sm:$0xff] (!%p153_p2)  ;;  %v1167_v10 = vld [vmem:[%s1245_s2 + $0x30] sm:$0xff] (!%p153_p2)  ;;  %p180_p3 = scmp.lt.s32.totalorder (!%p153_p2), %s846_s18, 1  ;;  %v245_v17 = vshrl.u32 (!%p153_p2), %v244_v14, 7  ;;  %s184_s12 = sld [smem:[#allocation3]] (!%p153_p2)  ;;  %vm1081_vm1 = vmmov (!%p153_p2), 0  }
   0x9   : > { %930 = vmatprep.mubr.msk.f32.mxu0 (!%p153_p2), %vm388_vm0, %v196_v0 }
   0xa   : > { %v246_v20 = vsub.s32 (!%p153_p2), 0, %v245_v17  ;;  %v330_v21 = vsub.s32 (!%p153_p2), 1, %v245_v17 }
   0xc   : > { %261 = vperm.xlu1 (!%p153_p2), %1050, %v1125_v3   ;;  %211 = vperm.xlu0 (!%p153_p2), %1049, %v1125_v3  }
   0xe   : > { %s1249_s18 = smov (!%p180_p3, %s846_s18), 1  ;;  %p185_p4 = scmp.lt.s32.totalorder %s184_s12, 39 }
   0xf   : > { %s851_s8 = sshll.u32 %s1249_s18, 1  ;;  %s853_s19 = sshll.u32 %s1249_s18, 2 }
  0x10   : > { %1051 = vset.pattern.permute.xlu1 %v1078_v5  ;;  %221 = vperm.xlu0 %1049, %v1132_v4   ;;  %s183_s11 = scalar_lea.vmem %s1244_s1, %s851_s8  ;;  %s1251_s12 = smov (!%p185_p4, %s184_s12), 39 }
  0x11   : > { %301 = vperm.xlu1 %1051, %v1125_v3   ;;  %v195_v22 = vld [vmem:[%s183_s11] sm:$0x3]  ;;  %s1033_s13 = smul.u32 72, %s1251_s12  ;;  %s194_s21 = scalar_lea.vmem %s1247_s4, %s853_s19 }
  0x12   : > { %v247_v24 = vrot.slane %v195_v22, %v246_v20  ;;  %v1196_v25 = vrot.slane %v195_v22, %v330_v21 }
  0x13   : > { %s189_s16 = scalar_lea.vmem %s1246_s3, %s1033_s13 }
  0x14   : > { %231 = vperm.xlu0 %1049, %v1139_v6  }
  0x15   : > { %1052 = vset.pattern.permute.xlu1 %v1077_v2 }
  0x16   : > { %216 = vperm.xlu1 %1052, %v1144_v7  }
  0x18   : > { %241 = vperm.xlu0 %1049, %v1150_v8  }
  0x1a   : > { %1053 = vset.pattern.permute.xlu1 %v1076_v1 }
  0x1b   : > { %265 = vperm.xlu1 %1053, %v1144_v7  }
  0x1c   : > { %1059 = vset.pattern.permute.xlu0 %v1078_v5 }
  0x1d   : > { %297 = vperm.xlu0 %1059, %v196_v0  }
  0x1f   : > { %269 = vperm.xlu1 %1053, %v1132_v4  }
  0x21   : > { %305 = vperm.xlu0 %1059, %v1144_v7  }
  0x23   : > { %1054 = vset.pattern.permute.xlu1 %v1078_v5 }
  0x24   : > { %309 = vperm.xlu1 %1054, %v1132_v4  }
  0x25   : > { %313 = vperm.xlu0 %1059, %v1161_v9  }
  0x28   : > { %1055 = vset.pattern.permute.xlu1 %v1077_v2 }
  0x29   : > { %226 = vperm.xlu1 %1055, %v1161_v9   ;;  %321 = vperm.xlu0 %1059, %v1167_v10  }
  0x2d   : > { %1056 = vset.pattern.permute.xlu1 %v1076_v1  ;;  %1063 = vset.pattern.permute.xlu0 %v1079_v11 }
  0x2e   : > { %273 = vperm.xlu1 %1056, %v1161_v9   ;;  %361 = vperm.xlu0 %1063, %v1125_v3  }
  0x32   : > { %277 = vperm.xlu1 %1056, %v1139_v6   ;;  %373 = vperm.xlu0 %1063, %v1161_v9  }
  0x36   : > { %1057 = vset.pattern.permute.xlu1 %v1078_v5  ;;  %381 = vperm.xlu0 %1063, %v1167_v10  }
  0x37   : > { %317 = vperm.xlu1 %1057, %v1139_v6  }
  0x3a   : > { %1064 = vset.pattern.permute.xlu0 %v1077_v2 }
  0x3b   : > { %1058 = vset.pattern.permute.xlu1 %v1077_v2 }
  0x3c   : > { %236 = vperm.xlu1 %1058, %v1167_v10  }
  0x40   : > { %1060 = vset.pattern.permute.xlu1 %v1076_v1 }
  0x41   : > { %281 = vperm.xlu1 %1060, %v1167_v10  }
  0x45   : > { %285 = vperm.xlu1 %1060, %v1150_v8  }
  0x49   : > { %1061 = vset.pattern.permute.xlu1 %v1078_v5 }
  0x4a   : > { %325 = vperm.xlu1 %1061, %v1150_v8  }
  0x4e   : > { %1062 = vset.pattern.permute.xlu1 %v1079_v11 }
  0x4f   : > { %357 = vperm.xlu1 %1062, %v196_v0  }
  0x53   : > { %365 = vperm.xlu1 %1062, %v1144_v7  }
  0x57   : > { %369 = vperm.xlu1 %1062, %v1132_v4  }
  0x5b   : > { %377 = vperm.xlu1 %1062, %v1139_v6  }
  0x5f   : > { %385 = vperm.xlu1 %1062, %v1150_v8  }
  0x63   : > { %1065 = vset.pattern.permute.xlu1 %v1077_v2 }
  0x87   : > { %v258_v12 = vpop.permute.xlu1 %257  ;;  %v207_v13 = vpop.permute.xlu0 %206 }
  0x88   : > { %v248_v29 = vmul.f32 %v247_v24, %v207_v13 }
  0x8a   : > { %v288_v34 = vadd.f32 %v258_v12, %v248_v29 }
  0x8b   : > { %v262_v15 = vpop.permute.xlu1 %261  ;;  %v212_v16 = vpop.permute.xlu0 %211 }
  0x8c   : > { %v249_v27 = vmul.f32 %v247_v24, %v212_v16 }
  0x8e   : > { %v289_v32 = vadd.f32 %v262_v15, %v249_v27 }
  0x8f   : > { %v222_v18 = vpop.permute.xlu0 %221 }
  0x90   : > { %v302_v19 = vpop.permute.xlu1 %301  ;;  %v251_v39 = vmul.f32 %v247_v24, %v222_v18 }
  0x91   : > { %v333_v30 = vmul.f32 %v1196_v25, %v302_v19 }
  0x93   : > { %v232_v23 = vpop.permute.xlu0 %231  ;;  %v341_v35 = vadd.f32 %v333_v30, %v289_v32 }
  0x94   : > { %v253_v62 = vmul.f32 %v247_v24, %v232_v23 }
  0x95   : > { %v217_v26 = vpop.permute.xlu1 %216  ;;  %v349_v42 = vmax.f32 %v341_v35, 0.0 }
  0x96   : > { %v250_v40 = vmul.f32 %v247_v24, %v217_v26 }
  0x97   : > { %v242_v28 = vpop.permute.xlu0 %241 }
  0x98   : > { %v255_v20 = vmul.f32 %v247_v24, %v242_v28 }
  0x9a   : > { %v266_v31 = vpop.permute.xlu1 %265 }
  0x9b   : > { %v290_v45 = vadd.f32 %v266_v31, %v250_v40 }
  0x9c   : > { %v298_v33 = vpop.permute.xlu0 %297 }
  0x9d   : > { %v332_v36 = vmul.f32 %v1196_v25, %v298_v33 }
  0x9e   : > { %v270_v37 = vpop.permute.xlu1 %269 }
  0x9f   : > { %v340_v38 = vadd.f32 %v332_v36, %v288_v34  ;;  %v291_v48 = vadd.f32 %v270_v37, %v251_v39 }
  0xa0   : > { %v306_v41 = vpop.permute.xlu0 %305 }
  0xa1   : > { %v348_v43 = vmax.f32 %v340_v38, 0.0  ;;  %v334_v44 = vmul.f32 %v1196_v25, %v306_v41 }
  0xa3   : > { %v310_v46 = vpop.permute.xlu1 %309  ;;  %v989_v47 = vpack.c.bf16 %v349_v42, %v348_v43  ;;  %v342_v49 = vadd.f32 %v334_v44, %v290_v45 }
  0xa4   : > { %v335_v50 = vmul.f32 %v1196_v25, %v310_v46  ;;  %v314_v57 = vpop.permute.xlu0 %313 }
  0xa5   : > { %990 = vmatprep.subr.bf16.mxu0 %v989_v47  ;;  %v350_v52 = vmax.f32 %v342_v49, 0.0  ;;  %v336_v61 = vmul.f32 %v1196_v25, %v314_v57 }
  0xa6   : > { %v343_v51 = vadd.f32 %v335_v50, %v291_v48  ;;  %992 = vmatpush3.bf16.msra.mxu0 %v989_v47 }
  0xa8   : > { %v351_v53 = vmax.f32 %v343_v51, 0.0  ;;  %v227_v54 = vpop.permute.xlu1 %226  ;;  %v322_v18 = vpop.permute.xlu0 %321 }
  0xa9   : > { %v252_v58 = vmul.f32 %v247_v24, %v227_v54  ;;  %v338_v21 = vmul.f32 %v1196_v25, %v322_v18 }
  0xaa   : > { %v993_v55 = vpack.c.bf16 %v351_v53, %v350_v52 }
  0xac   : > { %994 = vmatprep.subr.bf16.mxu0 %v993_v55 }
  0xad   : > { %v274_v56 = vpop.permute.xlu1 %273  ;;  %996 = vmatpush3.bf16.msra.mxu0 %v993_v55  ;;  %v362_v34 = vpop.permute.xlu0 %361 }
  0xae   : > { %v292_v60 = vadd.f32 %v274_v56, %v252_v58 }
  0xb0   : > { %v344_v0 = vadd.f32 %v336_v61, %v292_v60 }
  0xb1   : > { %v278_v59 = vpop.permute.xlu1 %277  ;;  %v374_v48 = vpop.permute.xlu0 %373 }
  0xb2   : > { %v293_v1 = vadd.f32 %v278_v59, %v253_v62  ;;  %v352_v11 = vmax.f32 %v344_v0, 0.0 }
  0xb5   : > { %v382_v60 = vpop.permute.xlu0 %381 }
  0xb6   : > { %v318_v63 = vpop.permute.xlu1 %317 }
  0xb7   : > { %v337_v2 = vmul.f32 %v1196_v25, %v318_v63 }
  0xb9   : > { %v345_v5 = vadd.f32 %v337_v2, %v293_v1 }
  0xbb   : > { %v353_v12 = vmax.f32 %v345_v5, 0.0  ;;  %v237_v13 = vpop.permute.xlu1 %236 }
  0xbc   : > { %v254_v16 = vmul.f32 %v247_v24, %v237_v13  ;;  %v525_v24 = vld [vmem:[%s189_s16 + $0x38] sm:$0xff] }
  0xbd   : > { %v997_v14 = vpack.c.bf16 %v353_v12, %v352_v11  ;;  %v1080_v11 = vmov 0.0|0.0   ;;  %v1082_v12 = vmov 0.0  }
  0xbf   : > { %998 = vmatprep.subr.bf16.mxu0 %v997_v14 }
  0xc0   : > { %v282_v15 = vpop.permute.xlu1 %281  ;;  %1000 = vmatpush3.bf16.msra.mxu0 %v997_v14 }
  0xc1   : > { %v294_v19 = vadd.f32 %v282_v15, %v254_v16 }
  0xc3   : > { %v346_v23 = vadd.f32 %v338_v21, %v294_v19 }
  0xc4   : > { %v286_v17 = vpop.permute.xlu1 %285 }
  0xc5   : > { %v295_v26 = vadd.f32 %v286_v17, %v255_v20  ;;  %v354_v30 = vmax.f32 %v346_v23, 0.0 }
  0xc9   : > { %v326_v22 = vpop.permute.xlu1 %325 }
  0xca   : > { %v339_v27 = vmul.f32 %v1196_v25, %v326_v22  ;;  %v1224_v25 = vld [vmem:[%s189_s16 + $0x40] sm:$0xff] }
  0xcc   : > { %v347_v29 = vadd.f32 %v339_v27, %v295_v26 }
  0xce   : > { %v355_v31 = vmax.f32 %v347_v29, 0.0  ;;  %v358_v28 = vpop.permute.xlu1 %357 }
  0xd0   : > { %v1001_v32 = vpack.c.bf16 %v355_v31, %v354_v30 }
  0xd2   : > { %1002 = vmatprep.subr.bf16.mxu0 %v1001_v32  ;;  %v366_v33 = vpop.permute.xlu1 %365 }
  0xd3   : > { %1004 = vmatpush3.bf16.msra.mxu0 %v1001_v32 }
  0xd4   : > { %1021 = vmatprep.subr.bf16.mxu0 %v1080_v11 }
  0xd6   : > { %931 = vmatmul.mubr.msk.f32.vlgmr.msra.gmra.mrb[0].mxu0 %vm388_vm0, %v1125_v3  ;;  %v518_v3 = vld [vmem:[%s189_s16] sm:$0xff]  ;;  %v370_v35 = vpop.permute.xlu1 %369 }
  0xd7   : > { %933 = vmatprep.mubr.msk.f32.mxu0 %vm388_vm0, %v1144_v7  ;;  %958 = vmatprep.mubr.msk.f32.mxu1 %vm388_vm0, %v518_v3  ;;  %v521_v7 = vld [vmem:[%s189_s16 + $0x18] sm:$0xff] }
  0xd8   : > { %529 = vperm.xlu0 %1064, %v518_v3  }
  0xda   : > { %934 = vmatmul.mubr.msk.f32.gmra.mrb[2].mxu0 %vm388_vm0, %v1132_v4  ;;  %v519_v4 = vld [vmem:[%s189_s16 + $0x8] sm:$0xff]  ;;  %v378_v45 = vpop.permute.xlu1 %377 }
  0xdb   : > { %936 = vmatprep.mubr.msk.f32.mxu0 %vm388_vm0, %v1161_v9  ;;  %534 = vperm.xlu1 %1065, %v519_v4   ;;  %v522_v9 = vld [vmem:[%s189_s16 + $0x20] sm:$0xff] }
  0xdc   : > { %544 = vperm.xlu0 %1064, %v521_v7  }
  0xde   : > { %937 = vmatmul.mubr.msk.f32.gmra.mrb[4].mxu0 %vm388_vm0, %v1139_v6  ;;  %v520_v6 = vld [vmem:[%s189_s16 + $0x10] sm:$0xff]  ;;  %v386_v57 = vpop.permute.xlu1 %385 }
  0xdf   : > { %939 = vmatprep.mubr.msk.f32.mxu0 %vm388_vm0, %v1167_v10  ;;  %539 = vperm.xlu1 %1065, %v520_v6   ;;  %v524_v10 = vld [vmem:[%s189_s16 + $0x30] sm:$0xff] }
  0xe2   : > { %940 = vmatmul.mubr.msk.f32.gmra.mrb[6].mxu0 %vm388_vm0, %v1150_v8  ;;  %v523_v8 = vld [vmem:[%s189_s16 + $0x28] sm:$0xff] }
  0xe3   : > { %549 = vperm.xlu1 %1065, %v522_v9   ;;  %554 = vperm.xlu0 %1064, %v523_v8  }
  0xe4   : > { %986 = vmatprep.mubr.msk.f32.mxu0 %vm1081_vm1, %v1082_v12 }
  0xe7   : > { %559 = vperm.xlu1 %1065, %v524_v10   ;;  %564 = vperm.xlu0 %1064, %v525_v24  }
  0xeb   : > { %698 = vperm.xlu1 %1065, %v1224_v25  }
 0x157   : > { %v530_v13 = vpop.permute.xlu0 %529 }
 0x15a   : > { %v535_v14 = vpop.permute.xlu1 %534 }
 0x15b   : > { %v545_v15 = vpop.permute.xlu0 %544 }
 0x15e   : > { %v540_v17 = vpop.permute.xlu1 %539 }
 0x162   : > { %v555_v29 = vpop.permute.xlu0 %554  ;;  %v550_v32 = vpop.permute.xlu1 %549 }
 0x1a9   : > { %v932_v36 = vpop.f32.mrb[0].mxu0 }
 0x1aa   : > { %v477_v37 = vadd.f32 %v932_v36, %v362_v34  ;;  %v471_v38 = vpop.f32.mrb[1].mxu0 }
 0x1ab   : > { %v472_v39 = vadd.f32 %v471_v38, %v358_v28  ;;  %v565_v28 = vpop.permute.xlu0 %564 }
 0x1ac   : > { %v511_v40 = vmax.f32 %v477_v37, 0.0 }
 0x1ad   : > { %v510_v41 = vmax.f32 %v472_v39, 0.0  ;;  %v935_v42 = vpop.f32.mrb[2].mxu0 }
 0x1ae   : > { %v487_v43 = vadd.f32 %v935_v42, %v370_v35  ;;  %v481_v44 = vpop.f32.mrb[3].mxu0  ;;  %v560_v35 = vpop.permute.xlu1 %559 }
 0x1af   : > { %v482_v46 = vadd.f32 %v481_v44, %v366_v33  ;;  %v1005_v47 = vpack.c.bf16 %v511_v40, %v510_v41 }
 0x1b0   : > { %v513_v49 = vmax.f32 %v487_v43, 0.0 }
 0x1b1   : > { %v512_v50 = vmax.f32 %v482_v46, 0.0  ;;  %v938_v51 = vpop.f32.mrb[4].mxu0  ;;  %1006 = vmatprep.subr.bf16.mxu1 %v1005_v47 }
 0x1b2   : > { %v497_v52 = vadd.f32 %v938_v51, %v378_v45  ;;  %v491_v53 = vpop.f32.mrb[5].mxu0  ;;  %1008 = vmatpush3.bf16.msra.mxu1 %v1005_v47  ;;  %v699_v43 = vpop.permute.xlu1 %698 }
 0x1b3   : > { %v1009_v54 = vpack.c.bf16 %v513_v49, %v512_v50  ;;  %v492_v55 = vadd.f32 %v491_v53, %v374_v48 }
 0x1b4   : > { %v515_v56 = vmax.f32 %v497_v52, 0.0 }
 0x1b5   : > { %v514_v58 = vmax.f32 %v492_v55, 0.0  ;;  %v941_v59 = vpop.f32.mrb[6].mxu0  ;;  %1010 = vmatprep.subr.bf16.mxu1 %v1009_v54 }
 0x1b6   : > { %v507_v61 = vadd.f32 %v941_v59, %v386_v57  ;;  %v501_v62 = vpop.f32.mrb[7].mxu0  ;;  %1012 = vmatpush3.bf16.msra.mxu1 %v1009_v54 }
 0x1b7   : > { %v1013_v63 = vpack.c.bf16 %v515_v56, %v514_v58  ;;  %v502_v0 = vadd.f32 %v501_v62, %v382_v60 }
 0x1b8   : > { %v517_v1 = vmax.f32 %v507_v61, 0.0 }
 0x1b9   : > { %v516_v2 = vmax.f32 %v502_v0, 0.0  ;;  %1014 = vmatprep.subr.bf16.mxu1 %v1013_v63 }
 0x1ba   : > { %1016 = vmatpush3.bf16.msra.mxu1 %v1013_v63 }
 0x1bb   : > { %v1017_v5 = vpack.c.bf16 %v517_v1, %v516_v2 }
 0x1bd   : > { %1018 = vmatprep.subr.bf16.mxu1 %v1017_v5 }
 0x1be   : > { %1020 = vmatpush3.bf16.msra.mxu1 %v1017_v5 }
 0x1c1   : > { %959 = vmatmul.mubr.msk.f32.vlgmr.msra.gmra.mrb[0].mxu1 %vm388_vm0, %v519_v4 }
 0x1c2   : > { %961 = vmatprep.mubr.msk.f32.mxu1 %vm388_vm0, %v520_v6 }
 0x1c5   : > { %962 = vmatmul.mubr.msk.f32.gmra.mrb[2].mxu1 %vm388_vm0, %v521_v7 }
 0x1c6   : > { %964 = vmatprep.mubr.msk.f32.mxu1 %vm388_vm0, %v522_v9 }
 0x1c9   : > { %965 = vmatmul.mubr.msk.f32.gmra.mrb[4].mxu1 %vm388_vm0, %v523_v8 }
 0x1ca   : > { %967 = vmatprep.mubr.msk.f32.mxu1 %vm388_vm0, %v524_v10 }
 0x1cd   : > { %968 = vmatmul.mubr.msk.f32.gmra.mrb[6].mxu1 %vm388_vm0, %v525_v24 }
 0x294   : > { %v960_v16 = vpop.f32.mrb[0].mxu1 }
 0x295   : > { %v655_v18 = vadd.f32 %v960_v16, %v535_v14  ;;  %v649_v19 = vpop.f32.mrb[1].mxu1 }
 0x296   : > { %v650_v20 = vadd.f32 %v649_v19, %v530_v13 }
 0x297   : > { %v689_v21 = vmax.f32 %v655_v18, 0.0 }
 0x298   : > { %v688_v22 = vmax.f32 %v650_v20, 0.0  ;;  %v963_v23 = vpop.f32.mrb[2].mxu1 }
 0x299   : > { %v665_v26 = vadd.f32 %v963_v23, %v545_v15  ;;  %v659_v27 = vpop.f32.mrb[3].mxu1 }
 0x29a   : > { %v1022_v30 = vpack.c.bf16 %v689_v21, %v688_v22  ;;  %v660_v31 = vadd.f32 %v659_v27, %v540_v17 }
 0x29b   : > { %v691_v3 = vmax.f32 %v665_v26, 0.0 }
 0x29c   : > { %v690_v4 = vmax.f32 %v660_v31, 0.0  ;;  %v966_v6 = vpop.f32.mrb[4].mxu1  ;;  %1023 = vmatpush3.bf16.msra.mxu0 %v1022_v30 }
 0x29d   : > { %v675_v7 = vadd.f32 %v966_v6, %v555_v29  ;;  %v669_v9 = vpop.f32.mrb[5].mxu1  ;;  %1024 = vmatprep.subr.bf16.mxu0 %v1080_v11 }
 0x29e   : > { %v1025_v8 = vpack.c.bf16 %v691_v3, %v690_v4  ;;  %v670_v10 = vadd.f32 %v669_v9, %v550_v32 }
 0x29f   : > { %v693_v24 = vmax.f32 %v675_v7, 0.0 }
 0x2a0   : > { %v692_v33 = vmax.f32 %v670_v10, 0.0  ;;  %v969_v34 = vpop.f32.mrb[6].mxu1  ;;  %1026 = vmatpush3.bf16.msra.mxu0 %v1025_v8 }
 0x2a1   : > { %v685_v36 = vadd.f32 %v969_v34, %v565_v28  ;;  %v679_v37 = vpop.f32.mrb[7].mxu1  ;;  %1027 = vmatprep.subr.bf16.mxu0 %v1080_v11 }
 0x2a2   : > { %v1028_v38 = vpack.c.bf16 %v693_v24, %v692_v33  ;;  %v680_v39 = vadd.f32 %v679_v37, %v560_v35 }
 0x2a3   : > { %v695_v40 = vmax.f32 %v685_v36, 0.0 }
 0x2a4   : > { %v694_v41 = vmax.f32 %v680_v39, 0.0  ;;  %1029 = vmatpush3.bf16.msra.mxu0 %v1028_v38 }
 0x2a5   : > { %1030 = vmatprep.subr.bf16.mxu0 %v1080_v11 }
 0x2a6   : > { %v1031_v42 = vpack.c.bf16 %v695_v40, %v694_v41 }
 0x2a8   : > { %1032 = vmatpush3.bf16.msra.mxu0 %v1031_v42 }
 0x2ab   : > { %987 = vmatmul.mubr.msk.f32.vlgmr.msra.gmra.mrb[8].mxu0 %vm388_vm0, %v1224_v25 }
 0x37e   : > { %v769_v44 = vpop.f32.mrb[8].mxu0 }
 0x37f   : > { %v770_v45 = vadd.f32 %v769_v44, %v699_v43  ;;  %v988_v46 = vpop.f32.mrb[9].mxu0 }
 0x381   : > { %773 = vst [vmem:[%s194_s21] sm:$0x3] %v770_v45  ;;  %v774_v47 = vmul.f32 0.5, %v770_v45 }
 0x383   : > { %v775_v48 = vmul.f32 1.442695, %v774_v47 }
 0x385   : > { %1066 = vpow2.f32 %v775_v48 }
 0x38f   : > { %v1067_v49 = vpop.eup %1066 }
 0x390   : > { %777 = vst [vmem:[%s194_s21] sm:$0xc] %v1067_v49 }
 0x391 PF: > { %s15_s17 = sadd.s32 1, %s1074_s17  }
 0x392   : > { %p12_p5 = scmp.ge.s32.totalorder %s15_s17, 4  }
 0x394   :  { %14 = sbr.rel (!%p12_p5) target bundleno = 2 (0x2), region = 65 }

</bundles_post_ra>
